<compile_context>
chip_gen: v7x
topology: tpu7x:2x2x1
jax: 0.10.0
libtpu: 0.0.40
codegen_flags: <defaults>
</compile_context>

<pallas_src>
import jax
import jax.numpy as jnp
from jax.experimental import pallas as pl
from jax.experimental.pallas import tpu as pltpu


def _round_up(x, m):
    return (x + m - 1) // m * m


# ----------------------------------------------------------------------------
# Pallas kernel: tiled matmul (bf16 x bf16 -> f32 acc) + bias + [ReLU] + [res]
# ----------------------------------------------------------------------------
def _make_kernel(relu: bool, add_res: bool):
    def kernel(*refs):
        if add_res:
            a_ref, w_ref, b_ref, r_ref, o_ref, acc_ref = refs
        else:
            a_ref, w_ref, b_ref, o_ref, acc_ref = refs
            r_ref = None
        k = pl.program_id(2)

        @pl.when(k == 0)
        def _init():
            acc_ref[...] = jnp.zeros_like(acc_ref)

        acc_ref[...] += jnp.dot(a_ref[...], w_ref[...],
                                preferred_element_type=jnp.float32)

        @pl.when(k == pl.num_programs(2) - 1)
        def _finalize():
            y = acc_ref[...] + b_ref[...]
            if relu:
                y = jnp.maximum(y, 0.0)
            if add_res:
                y = y + r_ref[...].astype(jnp.float32)
            o_ref[...] = y.astype(o_ref.dtype)

    return kernel


def fused_conv_matmul(a, w, bias, relu, residual=None, out_dtype=jnp.float32):
    """a: (M, K) patches; w: (K, Cout) with BN scale folded; bias: (Cout,)."""
    M, K = a.shape
    Kw, Cout = w.shape
    assert Kw == K

    # ---- tile / padding choices ---------------------------------------------
    tm = 256 if M > 256 else 128          # big tiles feed the 256-wide MXUs
    Mp = _round_up(M, tm)                 # >=2 M-blocks whenever M > 128
    tn = 256 if Cout > 256 else 128       # lane-dense output (>=128 wide)
    Np = _round_up(Cout, tn)
    TK_MAX = 512                          # bound per-step VMEM for big K
    if K <= TK_MAX:
        tk, Kp = K, K                     # single K block, no K padding
    else:
        tk = TK_MAX
        Kp = _round_up(K, tk)

    # ---- pad operands (zero padding contributes nothing to the matmul) ------
    a_p = jnp.pad(a.astype(jnp.bfloat16), ((0, Mp - M), (0, Kp - K)))
    w_p = jnp.pad(w.astype(jnp.bfloat16), ((0, Kp - K), (0, Np - Cout)))
    b_p = jnp.pad(bias.reshape(1, Cout).astype(jnp.float32),
                  ((0, 0), (0, Np - Cout)))

    in_specs = [
        pl.BlockSpec((tm, tk), lambda i, j, k: (i, k)),
        pl.BlockSpec((tk, tn), lambda i, j, k: (k, j)),
        pl.BlockSpec((1, tn), lambda i, j, k: (0, j)),
    ]
    args = [a_p, w_p, b_p]
    bytes_accessed = a_p.size * 2 + w_p.size * 2 + b_p.size * 4
    if residual is not None:
        r_p = jnp.pad(residual.astype(jnp.bfloat16),
                      ((0, Mp - M), (0, Np - Cout)))
        in_specs.append(pl.BlockSpec((tm, tn), lambda i, j, k: (i, j)))
        args.append(r_p)
        bytes_accessed += r_p.size * 2
    bytes_accessed += Mp * Np * jnp.dtype(out_dtype).itemsize

    grid = (Mp // tm, Np // tn, Kp // tk)
    out = pl.pallas_call(
        _make_kernel(relu, residual is not None),
        out_shape=jax.ShapeDtypeStruct((Mp, Np), out_dtype),
        grid=grid,
        in_specs=in_specs,
        out_specs=pl.BlockSpec((tm, tn), lambda i, j, k: (i, j)),
        scratch_shapes=[pltpu.VMEM((tm, tn), jnp.float32)],
        compiler_params=pltpu.CompilerParams(
            dimension_semantics=("parallel", "parallel", "arbitrary"),
            vmem_limit_bytes=32 * 1024 * 1024,
        ),
        cost_estimate=pl.CostEstimate(
            flops=2 * Mp * Kp * Np,
            transcendentals=0,
            bytes_accessed=int(bytes_accessed)),
    )(*args)
    return out[:M, :Cout]


# ----------------------------------------------------------------------------
# JAX glue: im2col (bf16), BN folding, block composition
# ----------------------------------------------------------------------------
def im2col(x_nhwc, k, stride, pad):
    N, H, W, C = x_nhwc.shape
    xp = jnp.pad(x_nhwc, ((0, 0), (pad, pad), (pad, pad), (0, 0)))
    Ho = (H + 2 * pad - k) // stride + 1
    Wo = (W + 2 * pad - k) // stride + 1
    cols = []
    for di in range(k):
        for dj in range(k):
            cols.append(
                xp[:, di:di + stride * Ho:stride, dj:dj + stride * Wo:stride, :])
    patches = jnp.stack(cols, axis=3)          # (N, Ho, Wo, k*k, C)
    return patches.reshape(N * Ho * Wo, k * k * C), (N, Ho, Wo)


def _folded_weight_bias(p):
    """Fold BN scale into the conv weight; return (K, Cout) weight and bias."""
    w = p["w"]                                  # (Cout, Cin, kh, kw)
    Cout, Cin, kh, kw = w.shape
    eps = 1e-5
    scale = p["gamma"] / jnp.sqrt(p["var"] + eps)
    bias = p["beta"] - p["mean"] * scale
    # (Cout, Cin, kh, kw) -> (kh, kw, Cin, Cout) -> (kh*kw*Cin, Cout)
    w2 = jnp.transpose(w, (2, 3, 1, 0)).reshape(kh * kw * Cin, Cout)
    return w2 * scale[None, :], bias


def _patches(x_nhwc, p):
    """bf16 patch matrix (M, K) plus output spatial dims."""
    kh = p["w"].shape[2]
    x_bf = x_nhwc.astype(jnp.bfloat16)
    if kh == 1 and p["pad"] == 0:
        s = p["stride"]
        xs = x_bf[:, ::s, ::s, :]
        N, Ho, Wo, C = xs.shape
        return xs.reshape(N * Ho * Wo, C), (N, Ho, Wo)
    return im2col(x_bf, kh, p["stride"], p["pad"])


def conv_bn_act(x_nhwc, p, relu, residual_nhwc=None, out_dtype=jnp.bfloat16):
    """One common_conv2d block: conv (bias=False) + BN (+ ReLU) (+ residual)."""
    Cout = p["w"].shape[0]
    a, (N, Ho, Wo) = _patches(x_nhwc, p)
    w2, bias = _folded_weight_bias(p)
    res = None
    if residual_nhwc is not None:
        res = residual_nhwc.reshape(N * Ho * Wo, Cout)
    out = fused_conv_matmul(a, w2, bias, relu, res, out_dtype=out_dtype)
    return out.reshape(N, Ho, Wo, Cout)


def make_conv_bn_params(key, cin, cout, k, stride, pad):
    w = 0.1 * jax.random.normal(key, (cout, cin, k, k), dtype=jnp.float32)
    idx = jnp.arange(cout, dtype=jnp.float32)
    return dict(
        w=w,
        gamma=1.0 + 0.01 * idx,
        beta=0.01 * idx,
        mean=0.001 * idx,
        var=1.0 + 0.01 * idx,
        stride=stride,
        pad=pad,
    )


def init_bottleneck(key, inplanes, planes, kernel, stride, exp):
    mid = int(planes * exp)
    keys = jax.random.split(key, 5)
    if stride == 1 and inplanes == planes:
        body = [
            make_conv_bn_params(keys[0], inplanes, mid, 1, 1, 0),
            make_conv_bn_params(keys[1], mid, mid, kernel, stride, kernel // 2),
            make_conv_bn_params(keys[2], mid, planes, 1, 1, 0),
        ]
        res = None
    else:
        body = [
            make_conv_bn_params(keys[0], inplanes, mid, 1, 1, 0),
            make_conv_bn_params(keys[1], mid, mid, kernel, stride, kernel // 2),
            make_conv_bn_params(keys[2], mid, mid, kernel, 1, kernel // 2),
            make_conv_bn_params(keys[3], mid, planes, 1, 1, 0),
        ]
        res = make_conv_bn_params(keys[4], inplanes, planes, kernel, stride,
                                  kernel // 2)
    return dict(body=body, res=res)


def bottleneck_forward(x_nchw, params):
    x = jnp.transpose(x_nchw, (0, 2, 3, 1))     # NCHW -> NHWC
    if params["res"] is not None:
        res = conv_bn_act(x, params["res"], relu=False)     # conv+BN, no ReLU
    else:
        res = x                                              # identity skip
    h = x
    body = params["body"]
    for p in body[:-1]:
        h = conv_bn_act(h, p, relu=True)
    # final block fuses the residual add: res + body(x)  (body ends with ReLU)
    out = conv_bn_act(h, body[-1], relu=True, residual_nhwc=res,
                      out_dtype=jnp.float32)
    return jnp.transpose(out, (0, 3, 1, 2))     # NHWC -> NCHW


# ----------------------------------------------------------------------------
# Pure-JAX reference with matching bf16-matmul precision (checks the wiring)
# ----------------------------------------------------------------------------
def _ref_conv_bn_act(x_nhwc, p, relu, residual_nhwc=None):
    Cout = p["w"].shape[0]
    a, (N, Ho, Wo) = _patches(x_nhwc, p)
    w2, bias = _folded_weight_bias(p)
    y = jnp.dot(a, w2.astype(jnp.bfloat16),
                preferred_element_type=jnp.float32) + bias[None, :]
    if relu:
        y = jnp.maximum(y, 0.0)
    if residual_nhwc is not None:
        r = residual_nhwc.astype(jnp.bfloat16).astype(jnp.float32)
        y = y + r.reshape(N * Ho * Wo, Cout)
    return y.reshape(N, Ho, Wo, Cout)


def bottleneck_reference(x_nchw, params):
    x = jnp.transpose(x_nchw, (0, 2, 3, 1))
    if params["res"] is not None:
        res = _ref_conv_bn_act(x, params["res"], relu=False).astype(jnp.bfloat16)
    else:
        res = x
    h = x
    for p in params["body"][:-1]:
        h = _ref_conv_bn_act(h, p, relu=True).astype(jnp.bfloat16)
    out = _ref_conv_bn_act(h, params["body"][-1], relu=True, residual_nhwc=res)
    return jnp.transpose(out, (0, 3, 1, 2)).astype(jnp.float32)


# ----------------------------------------------------------------------------
if __name__ == "__main__":
    key = jax.random.PRNGKey(0)
    k_x, k_p1, k_p2 = jax.random.split(key, 3)

    # Branch 1: stride == 1, inplanes == planes  ->  x + body(x)
    x1 = jax.random.normal(k_x, (2, 8, 16, 16), dtype=jnp.float32)
    p1 = init_bottleneck(k_p1, inplanes=8, planes=8, kernel=3, stride=1, exp=0.5)
    fwd1 = jax.jit(lambda x: bottleneck_forward(x, p1))
    y1 = jax.block_until_ready(fwd1(x1))
    assert y1.shape == (2, 8, 16, 16)
    ref1 = jax.block_until_ready(bottleneck_reference(x1, p1))
    assert jnp.allclose(y1, ref1, rtol=1e-2, atol=1e-2), \
        float(jnp.max(jnp.abs(y1 - ref1)))

    # Branch 2: stride != 1 (or channel change)  ->  res(x) + body(x)
    x2 = jax.random.normal(k_x, (2, 8, 16, 16), dtype=jnp.float32)
    p2 = init_bottleneck(k_p2, inplanes=8, planes=16, kernel=3, stride=2, exp=0.5)
    fwd2 = jax.jit(lambda x: bottleneck_forward(x, p2))
    y2 = jax.block_until_ready(fwd2(x2))
    assert y2.shape == (2, 16, 8, 8)
    ref2 = jax.block_until_ready(bottleneck_reference(x2, p2))
    assert jnp.allclose(y2, ref2, rtol=1e-2, atol=1e-2), \
        float(jnp.max(jnp.abs(y2 - ref2)))

    print("KERNEL_OK")
</pallas_src>

<mosaic_0001>
module attributes {stable_mosaic.version = 11 : i64} {
  func.func @kernel(%arg0: i32, %arg1: i32, %arg2: i32, %arg3: memref<256x8xbf16, #tpu.memory_space<vmem>>, %arg4: memref<8x128xbf16, #tpu.memory_space<vmem>>, %arg5: memref<1x128xf32, #tpu.memory_space<vmem>>, %arg6: memref<256x128xbf16, #tpu.memory_space<vmem>>, %arg7: memref<256x128xf32, #tpu.memory_space<vmem>>) attributes {dimension_semantics = [#tpu.dimension_semantics<parallel>, #tpu.dimension_semantics<parallel>, #tpu.dimension_semantics<arbitrary>], iteration_bounds = array<i64: 2, 1, 1>, scalar_prefetch = 0 : i64, scratch_operands = 1 : i64, tpu.core_type = #tpu.core_type<tc>, window_params = [{transform_indices = @transform_0, window_bounds = array<i64: 256, 8>}, {transform_indices = @transform_1, window_bounds = array<i64: 8, 128>}, {transform_indices = @transform_2, window_bounds = array<i64: 1, 128>}, {transform_indices = @transform_3, window_bounds = array<i64: 256, 128>}]} {
    %c0_i32 = arith.constant 0 : i32
    %0 = arith.cmpi eq, %arg2, %c0_i32 : i32
    %1 = arith.extui %0 : i1 to i32
    %c0_i32_0 = arith.constant 0 : i32
    %2 = arith.cmpi ne, %1, %c0_i32_0 : i32
    scf.if %2 {
      %cst_10 = arith.constant 0.000000e+00 : f32
      %12 = vector.broadcast %cst_10 : f32 to vector<256x128xf32>
      %c0_11 = arith.constant 0 : index
      %c0_12 = arith.constant 0 : index
      %13 = vector.load %arg7[%c0_11, %c0_12] : memref<256x128xf32, #tpu.memory_space<vmem>>, vector<256x128xf32>
      tpu.vector_store %arg7[%c0_11, %c0_12], %12 {strides = array<i32>} : memref<256x128xf32, #tpu.memory_space<vmem>>, vector<256x128xf32>,
    } else {
    }
    %c0 = arith.constant 0 : index
    %c0_1 = arith.constant 0 : index
    %3 = vector.load %arg7[%c0, %c0_1] : memref<256x128xf32, #tpu.memory_space<vmem>>, vector<256x128xf32>
    %c0_2 = arith.constant 0 : index
    %c0_3 = arith.constant 0 : index
    %4 = vector.load %arg3[%c0_2, %c0_3] : memref<256x8xbf16, #tpu.memory_space<vmem>>, vector<256x8xbf16>
    %c0_4 = arith.constant 0 : index
    %c0_5 = arith.constant 0 : index
    %5 = vector.load %arg4[%c0_4, %c0_5] : memref<8x128xbf16, #tpu.memory_space<vmem>>, vector<8x128xbf16>
    %cst = arith.constant dense<0.000000e+00> : vector<256x128xf32>
    %6 = tpu.matmul %4, %5, %cst {dimension_numbers = #tpu.dot_dimension_numbers<[1], [0], [0], [1], [0, 0, 1, 1], [], []>} : vector<256x8xbf16>, vector<8x128xbf16>, vector<256x128xf32> -> vector<256x128xf32>
    %7 = arith.addf %3, %6 : vector<256x128xf32>
    %c0_6 = arith.constant 0 : index
    %c0_7 = arith.constant 0 : index
    %8 = vector.load %arg7[%c0_6, %c0_7] : memref<256x128xf32, #tpu.memory_space<vmem>>, vector<256x128xf32>
    tpu.vector_store %arg7[%c0_6, %c0_7], %7 {strides = array<i32>} : memref<256x128xf32, #tpu.memory_space<vmem>>, vector<256x128xf32>,
    %c0_i32_8 = arith.constant 0 : i32
    %9 = arith.cmpi eq, %arg2, %c0_i32_8 : i32
    %10 = arith.extui %9 : i1 to i32
    %c0_i32_9 = arith.constant 0 : i32
    %11 = arith.cmpi ne, %10, %c0_i32_9 : i32
    scf.if %11 {
      %c0_10 = arith.constant 0 : index
      %c0_11 = arith.constant 0 : index
      %12 = vector.load %arg7[%c0_10, %c0_11] : memref<256x128xf32, #tpu.memory_space<vmem>>, vector<256x128xf32>
      %c0_12 = arith.constant 0 : index
      %c0_13 = arith.constant 0 : index
      %13 = vector.load %arg5[%c0_12, %c0_13] : memref<1x128xf32, #tpu.memory_space<vmem>>, vector<1x128xf32>
      %14 = vector.broadcast %13 : vector<1x128xf32> to vector<256x128xf32>
      %15 = arith.addf %12, %14 : vector<256x128xf32>
      %cst_14 = arith.constant 0.000000e+00 : f32
      %16 = vector.broadcast %cst_14 : f32 to vector<256x128xf32>
      %17 = arith.maximumf %15, %16 : vector<256x128xf32>
      %18 = arith.truncf %17 : vector<256x128xf32> to vector<256x128xbf16>
      %c0_15 = arith.constant 0 : index
      %c0_16 = arith.constant 0 : index
      %19 = vector.load %arg6[%c0_15, %c0_16] : memref<256x128xbf16, #tpu.memory_space<vmem>>, vector<256x128xbf16>
      tpu.vector_store %arg6[%c0_15, %c0_16], %18 {strides = array<i32>} : memref<256x128xbf16, #tpu.memory_space<vmem>>, vector<256x128xbf16>,
    } else {
    }
    return
  }
  func.func @transform_0(%arg0: i32, %arg1: i32, %arg2: i32) -> (i32, i32) {
    %c0_i32 = arith.constant 0 : i32
    return %arg0, %arg2 : i32, i32
  }
  func.func @transform_1(%arg0: i32, %arg1: i32, %arg2: i32) -> (i32, i32) {
    %c0_i32 = arith.constant 0 : i32
    return %arg2, %arg1 : i32, i32
  }
  func.func @transform_2(%arg0: i32, %arg1: i32, %arg2: i32) -> (i32, i32) {
    %c0_i32 = arith.constant 0 : i32
    %c0_i32_0 = arith.constant 0 : i32
    return %c0_i32, %arg1 : i32, i32
  }
  func.func @transform_3(%arg0: i32, %arg1: i32, %arg2: i32) -> (i32, i32) {
    %c0_i32 = arith.constant 0 : i32
    return %arg0, %arg1 : i32, i32
  }
}

module attributes {stable_mosaic.version = 11 : i64} {
  func.func @kernel(%arg0: i32, %arg1: i32, %arg2: i32, %arg3: memref<256x4xbf16, #tpu.memory_space<vmem>>, %arg4: memref<4x128xbf16, #tpu.memory_space<vmem>>, %arg5: memref<1x128xf32, #tpu.memory_space<vmem>>, %arg6: memref<256x128xbf16, #tpu.memory_space<vmem>>, %arg7: memref<256x128xf32, #tpu.memory_space<vmem>>, %arg8: memref<256x128xf32, #tpu.memory_space<vmem>>) attributes {dimension_semantics = [#tpu.dimension_semantics<parallel>, #tpu.dimension_semantics<parallel>, #tpu.dimension_semantics<arbitrary>], iteration_bounds = array<i64: 2, 1, 1>, scalar_prefetch = 0 : i64, scratch_operands = 1 : i64, tpu.core_type = #tpu.core_type<tc>, window_params = [{transform_indices = @transform_0, window_bounds = array<i64: 256, 4>}, {transform_indices = @transform_1, window_bounds = array<i64: 4, 128>}, {transform_indices = @transform_2, window_bounds = array<i64: 1, 128>}, {transform_indices = @transform_3, window_bounds = array<i64: 256, 128>}, {transform_indices = @transform_4, window_bounds = array<i64: 256, 128>}]} {
    %c0_i32 = arith.constant 0 : i32
    %0 = arith.cmpi eq, %arg2, %c0_i32 : i32
    %1 = arith.extui %0 : i1 to i32
    %c0_i32_0 = arith.constant 0 : i32
    %2 = arith.cmpi ne, %1, %c0_i32_0 : i32
    scf.if %2 {
      %cst_10 = arith.constant 0.000000e+00 : f32
      %12 = vector.broadcast %cst_10 : f32 to vector<256x128xf32>
      %c0_11 = arith.constant 0 : index
      %c0_12 = arith.constant 0 : index
      %13 = vector.load %arg8[%c0_11, %c0_12] : memref<256x128xf32, #tpu.memory_space<vmem>>, vector<256x128xf32>
      tpu.vector_store %arg8[%c0_11, %c0_12], %12 {strides = array<i32>} : memref<256x128xf32, #tpu.memory_space<vmem>>, vector<256x128xf32>,
    } else {
    }
    %c0 = arith.constant 0 : index
    %c0_1 = arith.constant 0 : index
    %3 = vector.load %arg8[%c0, %c0_1] : memref<256x128xf32, #tpu.memory_space<vmem>>, vector<256x128xf32>
    %c0_2 = arith.constant 0 : index
    %c0_3 = arith.constant 0 : index
    %4 = vector.load %arg3[%c0_2, %c0_3] : memref<256x4xbf16, #tpu.memory_space<vmem>>, vector<256x4xbf16>
    %c0_4 = arith.constant 0 : index
    %c0_5 = arith.constant 0 : index
    %5 = vector.load %arg4[%c0_4, %c0_5] : memref<4x128xbf16, #tpu.memory_space<vmem>>, vector<4x128xbf16>
    %cst = arith.constant dense<0.000000e+00> : vector<256x128xf32>
    %6 = tpu.matmul %4, %5, %cst {dimension_numbers = #tpu.dot_dimension_numbers<[1], [0], [0], [1], [0, 0, 1, 1], [], []>} : vector<256x4xbf16>, vector<4x128xbf16>, vector<256x128xf32> -> vector<256x128xf32>
    %7 = arith.addf %3, %6 : vector<256x128xf32>
    %c0_6 = arith.constant 0 : index
    %c0_7 = arith.constant 0 : index
    %8 = vector.load %arg8[%c0_6, %c0_7] : memref<256x128xf32, #tpu.memory_space<vmem>>, vector<256x128xf32>
    tpu.vector_store %arg8[%c0_6, %c0_7], %7 {strides = array<i32>} : memref<256x128xf32, #tpu.memory_space<vmem>>, vector<256x128xf32>,
    %c0_i32_8 = arith.constant 0 : i32
    %9 = arith.cmpi eq, %arg2, %c0_i32_8 : i32
    %10 = arith.extui %9 : i1 to i32
    %c0_i32_9 = arith.constant 0 : i32
    %11 = arith.cmpi ne, %10, %c0_i32_9 : i32
    scf.if %11 {
      %c0_10 = arith.constant 0 : index
      %c0_11 = arith.constant 0 : index
      %12 = vector.load %arg8[%c0_10, %c0_11] : memref<256x128xf32, #tpu.memory_space<vmem>>, vector<256x128xf32>
      %c0_12 = arith.constant 0 : index
      %c0_13 = arith.constant 0 : index
      %13 = vector.load %arg5[%c0_12, %c0_13] : memref<1x128xf32, #tpu.memory_space<vmem>>, vector<1x128xf32>
      %14 = vector.broadcast %13 : vector<1x128xf32> to vector<256x128xf32>
      %15 = arith.addf %12, %14 : vector<256x128xf32>
      %cst_14 = arith.constant 0.000000e+00 : f32
      %16 = vector.broadcast %cst_14 : f32 to vector<256x128xf32>
      %17 = arith.maximumf %15, %16 : vector<256x128xf32>
      %c0_15 = arith.constant 0 : index
      %c0_16 = arith.constant 0 : index
      %18 = vector.load %arg6[%c0_15, %c0_16] : memref<256x128xbf16, #tpu.memory_space<vmem>>, vector<256x128xbf16>
      %19 = arith.extf %18 : vector<256x128xbf16> to vector<256x128xf32>
      %20 = arith.addf %17, %19 : vector<256x128xf32>
      %c0_17 = arith.constant 0 : index
      %c0_18 = arith.constant 0 : index
      %21 = vector.load %arg7[%c0_17, %c0_18] : memref<256x128xf32, #tpu.memory_space<vmem>>, vector<256x128xf32>
      tpu.vector_store %arg7[%c0_17, %c0_18], %20 {strides = array<i32>} : memref<256x128xf32, #tpu.memory_space<vmem>>, vector<256x128xf32>,
    } else {
    }
    return
  }
  func.func @transform_0(%arg0: i32, %arg1: i32, %arg2: i32) -> (i32, i32) {
    %c0_i32 = arith.constant 0 : i32
    return %arg0, %arg2 : i32, i32
  }
  func.func @transform_1(%arg0: i32, %arg1: i32, %arg2: i32) -> (i32, i32) {
    %c0_i32 = arith.constant 0 : i32
    return %arg2, %arg1 : i32, i32
  }
  func.func @transform_2(%arg0: i32, %arg1: i32, %arg2: i32) -> (i32, i32) {
    %c0_i32 = arith.constant 0 : i32
    %c0_i32_0 = arith.constant 0 : i32
    return %c0_i32, %arg1 : i32, i32
  }
  func.func @transform_3(%arg0: i32, %arg1: i32, %arg2: i32) -> (i32, i32) {
    %c0_i32 = arith.constant 0 : i32
    return %arg0, %arg1 : i32, i32
  }
  func.func @transform_4(%arg0: i32, %arg1: i32, %arg2: i32) -> (i32, i32) {
    %c0_i32 = arith.constant 0 : i32
    return %arg0, %arg1 : i32, i32
  }
}

module attributes {stable_mosaic.version = 11 : i64} {
  func.func @kernel(%arg0: i32, %arg1: i32, %arg2: i32, %arg3: memref<256x36xbf16, #tpu.memory_space<vmem>>, %arg4: memref<36x128xbf16, #tpu.memory_space<vmem>>, %arg5: memref<1x128xf32, #tpu.memory_space<vmem>>, %arg6: memref<256x128xbf16, #tpu.memory_space<vmem>>, %arg7: memref<256x128xf32, #tpu.memory_space<vmem>>) attributes {dimension_semantics = [#tpu.dimension_semantics<parallel>, #tpu.dimension_semantics<parallel>, #tpu.dimension_semantics<arbitrary>], iteration_bounds = array<i64: 2, 1, 1>, scalar_prefetch = 0 : i64, scratch_operands = 1 : i64, tpu.core_type = #tpu.core_type<tc>, window_params = [{transform_indices = @transform_0, window_bounds = array<i64: 256, 36>}, {transform_indices = @transform_1, window_bounds = array<i64: 36, 128>}, {transform_indices = @transform_2, window_bounds = array<i64: 1, 128>}, {transform_indices = @transform_3, window_bounds = array<i64: 256, 128>}]} {
    %c0_i32 = arith.constant 0 : i32
    %0 = arith.cmpi eq, %arg2, %c0_i32 : i32
    %1 = arith.extui %0 : i1 to i32
    %c0_i32_0 = arith.constant 0 : i32
    %2 = arith.cmpi ne, %1, %c0_i32_0 : i32
    scf.if %2 {
      %cst_10 = arith.constant 0.000000e+00 : f32
      %12 = vector.broadcast %cst_10 : f32 to vector<256x128xf32>
      %c0_11 = arith.constant 0 : index
      %c0_12 = arith.constant 0 : index
      %13 = vector.load %arg7[%c0_11, %c0_12] : memref<256x128xf32, #tpu.memory_space<vmem>>, vector<256x128xf32>
      tpu.vector_store %arg7[%c0_11, %c0_12], %12 {strides = array<i32>} : memref<256x128xf32, #tpu.memory_space<vmem>>, vector<256x128xf32>,
    } else {
    }
    %c0 = arith.constant 0 : index
    %c0_1 = arith.constant 0 : index
    %3 = vector.load %arg7[%c0, %c0_1] : memref<256x128xf32, #tpu.memory_space<vmem>>, vector<256x128xf32>
    %c0_2 = arith.constant 0 : index
    %c0_3 = arith.constant 0 : index
    %4 = vector.load %arg3[%c0_2, %c0_3] : memref<256x36xbf16, #tpu.memory_space<vmem>>, vector<256x36xbf16>
    %c0_4 = arith.constant 0 : index
    %c0_5 = arith.constant 0 : index
    %5 = vector.load %arg4[%c0_4, %c0_5] : memref<36x128xbf16, #tpu.memory_space<vmem>>, vector<36x128xbf16>
    %cst = arith.constant dense<0.000000e+00> : vector<256x128xf32>
    %6 = tpu.matmul %4, %5, %cst {dimension_numbers = #tpu.dot_dimension_numbers<[1], [0], [0], [1], [0, 0, 1, 1], [], []>} : vector<256x36xbf16>, vector<36x128xbf16>, vector<256x128xf32> -> vector<256x128xf32>
    %7 = arith.addf %3, %6 : vector<256x128xf32>
    %c0_6 = arith.constant 0 : index
    %c0_7 = arith.constant 0 : index
    %8 = vector.load %arg7[%c0_6, %c0_7] : memref<256x128xf32, #tpu.memory_space<vmem>>, vector<256x128xf32>
    tpu.vector_store %arg7[%c0_6, %c0_7], %7 {strides = array<i32>} : memref<256x128xf32, #tpu.memory_space<vmem>>, vector<256x128xf32>,
    %c0_i32_8 = arith.constant 0 : i32
    %9 = arith.cmpi eq, %arg2, %c0_i32_8 : i32
    %10 = arith.extui %9 : i1 to i32
    %c0_i32_9 = arith.constant 0 : i32
    %11 = arith.cmpi ne, %10, %c0_i32_9 : i32
    scf.if %11 {
      %c0_10 = arith.constant 0 : index
      %c0_11 = arith.constant 0 : index
      %12 = vector.load %arg7[%c0_10, %c0_11] : memref<256x128xf32, #tpu.memory_space<vmem>>, vector<256x128xf32>
      %c0_12 = arith.constant 0 : index
      %c0_13 = arith.constant 0 : index
      %13 = vector.load %arg5[%c0_12, %c0_13] : memref<1x128xf32, #tpu.memory_space<vmem>>, vector<1x128xf32>
      %14 = vector.broadcast %13 : vector<1x128xf32> to vector<256x128xf32>
      %15 = arith.addf %12, %14 : vector<256x128xf32>
      %cst_14 = arith.constant 0.000000e+00 : f32
      %16 = vector.broadcast %cst_14 : f32 to vector<256x128xf32>
      %17 = arith.maximumf %15, %16 : vector<256x128xf32>
      %18 = arith.truncf %17 : vector<256x128xf32> to vector<256x128xbf16>
      %c0_15 = arith.constant 0 : index
      %c0_16 = arith.constant 0 : index
      %19 = vector.load %arg6[%c0_15, %c0_16] : memref<256x128xbf16, #tpu.memory_space<vmem>>, vector<256x128xbf16>
      tpu.vector_store %arg6[%c0_15, %c0_16], %18 {strides = array<i32>} : memref<256x128xbf16, #tpu.memory_space<vmem>>, vector<256x128xbf16>,
    } else {
    }
    return
  }
  func.func @transform_0(%arg0: i32, %arg1: i32, %arg2: i32) -> (i32, i32) {
    %c0_i32 = arith.constant 0 : i32
    return %arg0, %arg2 : i32, i32
  }
  func.func @transform_1(%arg0: i32, %arg1: i32, %arg2: i32) -> (i32, i32) {
    %c0_i32 = arith.constant 0 : i32
    return %arg2, %arg1 : i32, i32
  }
  func.func @transform_2(%arg0: i32, %arg1: i32, %arg2: i32) -> (i32, i32) {
    %c0_i32 = arith.constant 0 : i32
    %c0_i32_0 = arith.constant 0 : i32
    return %c0_i32, %arg1 : i32, i32
  }
  func.func @transform_3(%arg0: i32, %arg1: i32, %arg2: i32) -> (i32, i32) {
    %c0_i32 = arith.constant 0 : i32
    return %arg0, %arg1 : i32, i32
  }
}

</mosaic_0001>

<bundles_post_ra>
// kernel: _lambda_.3
= control target key start
LH: loop header
LB: loop body
LE: loop exit
PB: predicated region body
PF: predicated region fallthrough
CT: control target
= control target key end

     0   :  { %s1435_s12 = smov 0   ;;  %s1437_s13 = smov 0   ;;  %s1567_s0 = inlined_call_operand.vmem [shape: bf16[512,8], index: 0, kind: input, shape index: {}]   ;;  %s1568_s1 = inlined_call_operand.vmem [shape: bf16[8,128], index: 1, kind: input, shape index: {}]   ;;  %s1569_s2 = inlined_call_operand.vmem [shape: f32[1,128], index: 2, kind: input, shape index: {}]   ;;  %s1570_s3 = inlined_call_operand.vmem [shape: bf16[512,128], index: 3, kind: output, shape index: {}]  }
   0x1   :  { %s1439_s14 = smov 0  }
   0x2 LB: > { %s32_s15 = sadd.s32 1, %s1409_s13  ;;  %p1097_p0 = scmp.ge.s32.totalorder %s1413_s14, 1  ;;  %s1413_s14 = sphi %s1439_s14, %s13_s14   ;;  %s1409_s13 = sphi %s1437_s13, %s1572_s13   ;;  %s1405_s12 = sphi %s1435_s12, %s1571_s12  }
   0x3   : > { %p34_p1 = scmp.ge.s32.totalorder %s32_s15, 2  ;;  %p186_p2 = scmp.lt.s32.totalorder %s1413_s14, 3 }
   0x5   : > { %s1574_s15 = smov (%p34_p1, %s32_s15), 0  ;;  %p187_p3 = pnand %p1097_p0, %p186_p2 }
   0x6   : > { %v355_v0 = vld [vmem:[%s1568_s1] sm:$0xf] (!%p187_p3)  ;;  %vm485_vm0 = vcmask (!%p187_p3), 1043456   ;;  %s1098_s18 = sshll.u32 (!%p187_p3), %s1405_s12, 5  ;;  %vm436_vm1 = vcmask (!%p187_p3), 64512  }
   0x7   : > { %190 = sbr.rel (%p187_p3) target bundleno = 266 (0x10a), region = 32  ;;  %1349 = vmatprep.subr.msk.bf16.mxu0 (!%p187_p3), %vm485_vm0, %v355_v0  ;;  %1350 = vmatprep.subr.msk.bf16.mxu1 (!%p187_p3), %vm485_vm0, %v355_v0  ;;  %v487_v1 = vsel (!%p187_p3), %vm485_vm0, %v355_v0, 0  ;;  %p227_p4 = scmp.lt.s32.totalorder (!%p187_p3), %s1098_s18, 63  ;;  %v1501_v18 = vld [vmem:[%s1569_s2] ss:$0 sm:$0xff] (!%p187_p3) }
   0x8   : > { %1314 = vmatpush3.bf16.msra.mxu0 (!%p187_p3), %v487_v1  ;;  %1348 = vmatpush3.bf16.msra.mxu1 (!%p187_p3), %v487_v1 }
   0xe   : > { %s1576_s18 = smov (!%p227_p4, %s1098_s18), 63 }
   0xf   : > { %s1099_s19 = sshll.u32 %s1576_s18, 2 }
  0x10   : > { %s1464_s22 = scalar_lea.vmem %s1567_s0, %s1099_s19  ;;  %s1516_s27 = scalar_lea.vmem %s1570_s3, %s1099_s19 }
  0x11   : > { %v1375_v2 = vld [vmem:[%s1464_s22] sm:$0xff]   ;;  %v1377_v4 = vld [vmem:[%s1464_s22 + $0x8] sm:$0xff]   ;;  %v1379_v6 = vld [vmem:[%s1464_s22 + $0x10] sm:$0xff]  }
  0x12   : > { %v1376_v3 = vld [vmem:[%s1464_s22 + $0x40] sm:$0xff]   ;;  %1315 = vmatprep.mubr.msk.bf16.mxu0 %vm436_vm1, %v1375_v2  ;;  %v1378_v5 = vld [vmem:[%s1464_s22 + $0x48] sm:$0xff]   ;;  %v1380_v7 = vld [vmem:[%s1464_s22 + $0x50] sm:$0xff]  }
  0x13   : > { %1331 = vmatprep.mubr.msk.bf16.mxu1 %vm436_vm1, %v1376_v3  ;;  %1316 = vmatmul.mubr.msk.bf16.vlgmr.msra.gmra.mrb[0].mxu0 %vm436_vm1, %v1377_v4  ;;  %v1381_v8 = vld [vmem:[%s1464_s22 + $0x18] sm:$0xff]   ;;  %v1383_v10 = vld [vmem:[%s1464_s22 + $0x20] sm:$0xff]   ;;  %v1385_v12 = vld [vmem:[%s1464_s22 + $0x28] sm:$0xff]  }
  0x14   : > { %1332 = vmatmul.mubr.msk.bf16.vlgmr.msra.gmra.mrb[0].mxu1 %vm436_vm1, %v1378_v5  ;;  %1319 = vmatprep.mubr.msk.bf16.mxu0 %vm436_vm1, %v1379_v6  ;;  %v1382_v9 = vld [vmem:[%s1464_s22 + $0x58] sm:$0xff]   ;;  %v1384_v11 = vld [vmem:[%s1464_s22 + $0x60] sm:$0xff]   ;;  %v1386_v13 = vld [vmem:[%s1464_s22 + $0x68] sm:$0xff]  }
  0x15   : > { %1335 = vmatprep.mubr.msk.bf16.mxu1 %vm436_vm1, %v1380_v7  ;;  %v1387_v14 = vld [vmem:[%s1464_s22 + $0x30] sm:$0xff]   ;;  %v1389_v16 = vld [vmem:[%s1464_s22 + $0x38] sm:$0xff]  }
  0x16   : > { %v1388_v15 = vld [vmem:[%s1464_s22 + $0x70] sm:$0xff]   ;;  %v1390_v17 = vld [vmem:[%s1464_s22 + $0x78] sm:$0xff]  }
  0x1b   : > { %1320 = vmatmul.mubr.msk.bf16.gmra.mrb[4].mxu0 %vm436_vm1, %v1381_v8 }
  0x1c   : > { %1336 = vmatmul.mubr.msk.bf16.gmra.mrb[4].mxu1 %vm436_vm1, %v1382_v9  ;;  %1323 = vmatprep.mubr.msk.bf16.mxu0 %vm436_vm1, %v1383_v10 }
  0x1d   : > { %1339 = vmatprep.mubr.msk.bf16.mxu1 %vm436_vm1, %v1384_v11 }
  0x23   : > { %1324 = vmatmul.mubr.msk.bf16.gmra.mrb[8].mxu0 %vm436_vm1, %v1385_v12 }
  0x24   : > { %1340 = vmatmul.mubr.msk.bf16.gmra.mrb[8].mxu1 %vm436_vm1, %v1386_v13  ;;  %1327 = vmatprep.mubr.msk.bf16.mxu0 %vm436_vm1, %v1387_v14 }
  0x25   : > { %1343 = vmatprep.mubr.msk.bf16.mxu1 %vm436_vm1, %v1388_v15 }
  0x2b   : > { %1328 = vmatmul.mubr.msk.bf16.gmra.mrb[12].mxu0 %vm436_vm1, %v1389_v16 }
  0x2c   : > { %1344 = vmatmul.mubr.msk.bf16.gmra.mrb[12].mxu1 %vm436_vm1, %v1390_v17 }
  0xe6   : > { %v1317_v19 = vpop.f32.mrb[0].mxu0 }
  0xe7   : > { %v758_v20 = vadd.f32 %v1317_v19, %v1501_v18  ;;  %v1333_v21 = vpop.f32.mrb[0].mxu1  ;;  %v523_v22 = vpop.f32.mrb[1].mxu0 }
  0xe8   : > { %v774_v23 = vadd.f32 %v1333_v21, %v1501_v18  ;;  %v756_v24 = vadd.f32 %v1501_v18, %v523_v22  ;;  %v587_v25 = vpop.f32.mrb[1].mxu1  ;;  %v1318_v26 = vpop.f32.mrb[2].mxu0 }
  0xe9   : > { %v772_v27 = vadd.f32 %v1501_v18, %v587_v25  ;;  %v759_v28 = vadd.f32 %v1318_v26, %v1501_v18  ;;  %v1334_v29 = vpop.f32.mrb[2].mxu1  ;;  %v526_v30 = vpop.f32.mrb[3].mxu0  ;;  %v790_v34 = vmax.f32 %v758_v20, 0.0 }
  0xea   : > { %v775_v31 = vadd.f32 %v1334_v29, %v1501_v18  ;;  %v757_v32 = vadd.f32 %v1501_v18, %v526_v30  ;;  %v590_v33 = vpop.f32.mrb[3].mxu1  ;;  %v806_v37 = vmax.f32 %v774_v23, 0.0  ;;  %v788_v38 = vmax.f32 %v756_v24, 0.0 }
  0xeb   : > { %v791_v35 = vmax.f32 %v759_v28, 0.0  ;;  %v773_v36 = vadd.f32 %v1501_v18, %v590_v33  ;;  %v804_v41 = vmax.f32 %v772_v27, 0.0 }
  0xec   : > { %v807_v39 = vmax.f32 %v775_v31, 0.0  ;;  %v789_v40 = vmax.f32 %v757_v32, 0.0 }
  0xed   : > { %v1209_v42 = vpack.c.bf16 %v791_v35, %v790_v34  ;;  %v805_v43 = vmax.f32 %v773_v36, 0.0 }
  0xee   : > { %v1249_v44 = vpack.c.bf16 %v807_v39, %v806_v37  ;;  %v1204_v45 = vpack.c.bf16 %v789_v40, %v788_v38  ;;  %v1321_v46 = vpop.f32.mrb[4].mxu0 }
  0xef   : > { %1281 = vst [vmem:[%s1516_s27 + $0x8] sm:$0xff] %v1209_v42   ;;  %v1244_v47 = vpack.c.bf16 %v805_v43, %v804_v41  ;;  %v762_v48 = vadd.f32 %v1321_v46, %v1501_v18  ;;  %v1337_v49 = vpop.f32.mrb[4].mxu1  ;;  %v539_v50 = vpop.f32.mrb[5].mxu0 }
  0xf0   : > { %1289 = vst [vmem:[%s1516_s27 + $0x48] sm:$0xff] %v1249_v44   ;;  %1205 = vst [vmem:[%s1516_s27] sm:$0xff] %v1204_v45   ;;  %v778_v51 = vadd.f32 %v1337_v49, %v1501_v18  ;;  %v760_v52 = vadd.f32 %v1501_v18, %v539_v50  ;;  %v603_v53 = vpop.f32.mrb[5].mxu1  ;;  %v1322_v54 = vpop.f32.mrb[6].mxu0 }
  0xf1   : > { %1288 = vst [vmem:[%s1516_s27 + $0x40] sm:$0xff] %v1244_v47   ;;  %v776_v55 = vadd.f32 %v1501_v18, %v603_v53  ;;  %v763_v56 = vadd.f32 %v1322_v54, %v1501_v18  ;;  %v1338_v57 = vpop.f32.mrb[6].mxu1  ;;  %v542_v58 = vpop.f32.mrb[7].mxu0  ;;  %v794_v62 = vmax.f32 %v762_v48, 0.0 }
  0xf2   : > { %v779_v59 = vadd.f32 %v1338_v57, %v1501_v18  ;;  %v761_v60 = vadd.f32 %v1501_v18, %v542_v58  ;;  %v606_v61 = vpop.f32.mrb[7].mxu1  ;;  %v810_v1 = vmax.f32 %v778_v51, 0.0  ;;  %v792_v2 = vmax.f32 %v760_v52, 0.0 }
  0xf3   : > { %v795_v63 = vmax.f32 %v763_v56, 0.0  ;;  %v777_v0 = vadd.f32 %v1501_v18, %v606_v61  ;;  %v808_v5 = vmax.f32 %v776_v55, 0.0 }
  0xf4   : > { %v811_v3 = vmax.f32 %v779_v59, 0.0  ;;  %v793_v4 = vmax.f32 %v761_v60, 0.0 }
  0xf5   : > { %v1219_v6 = vpack.c.bf16 %v795_v63, %v794_v62  ;;  %v809_v7 = vmax.f32 %v777_v0, 0.0 }
  0xf6   : > { %v1259_v8 = vpack.c.bf16 %v811_v3, %v810_v1  ;;  %v1214_v9 = vpack.c.bf16 %v793_v4, %v792_v2  ;;  %v1325_v10 = vpop.f32.mrb[8].mxu0 }
  0xf7   : > { %1283 = vst [vmem:[%s1516_s27 + $0x18] sm:$0xff] %v1219_v6   ;;  %v1254_v11 = vpack.c.bf16 %v809_v7, %v808_v5  ;;  %v766_v12 = vadd.f32 %v1325_v10, %v1501_v18  ;;  %v1341_v13 = vpop.f32.mrb[8].mxu1  ;;  %v555_v14 = vpop.f32.mrb[9].mxu0 }
  0xf8   : > { %1291 = vst [vmem:[%s1516_s27 + $0x58] sm:$0xff] %v1259_v8   ;;  %1282 = vst [vmem:[%s1516_s27 + $0x10] sm:$0xff] %v1214_v9   ;;  %v782_v15 = vadd.f32 %v1341_v13, %v1501_v18  ;;  %v764_v16 = vadd.f32 %v1501_v18, %v555_v14  ;;  %v619_v17 = vpop.f32.mrb[9].mxu1  ;;  %v1326_v19 = vpop.f32.mrb[10].mxu0 }
  0xf9   : > { %1290 = vst [vmem:[%s1516_s27 + $0x50] sm:$0xff] %v1254_v11   ;;  %v780_v20 = vadd.f32 %v1501_v18, %v619_v17  ;;  %v767_v21 = vadd.f32 %v1326_v19, %v1501_v18  ;;  %v1342_v22 = vpop.f32.mrb[10].mxu1  ;;  %v558_v23 = vpop.f32.mrb[11].mxu0  ;;  %v798_v27 = vmax.f32 %v766_v12, 0.0 }
  0xfa   : > { %v783_v24 = vadd.f32 %v1342_v22, %v1501_v18  ;;  %v765_v25 = vadd.f32 %v1501_v18, %v558_v23  ;;  %v622_v26 = vpop.f32.mrb[11].mxu1  ;;  %v814_v30 = vmax.f32 %v782_v15, 0.0  ;;  %v796_v31 = vmax.f32 %v764_v16, 0.0 }
  0xfb   : > { %v799_v28 = vmax.f32 %v767_v21, 0.0  ;;  %v781_v29 = vadd.f32 %v1501_v18, %v622_v26  ;;  %v812_v34 = vmax.f32 %v780_v20, 0.0 }
  0xfc   : > { %v815_v32 = vmax.f32 %v783_v24, 0.0  ;;  %v797_v33 = vmax.f32 %v765_v25, 0.0 }
  0xfd   : > { %v1229_v35 = vpack.c.bf16 %v799_v28, %v798_v27  ;;  %v813_v36 = vmax.f32 %v781_v29, 0.0 }
  0xfe   : > { %v1269_v37 = vpack.c.bf16 %v815_v32, %v814_v30  ;;  %v1224_v38 = vpack.c.bf16 %v797_v33, %v796_v31  ;;  %v1329_v39 = vpop.f32.mrb[12].mxu0 }
  0xff   : > { %1285 = vst [vmem:[%s1516_s27 + $0x28] sm:$0xff] %v1229_v35   ;;  %v1264_v40 = vpack.c.bf16 %v813_v36, %v812_v34  ;;  %v770_v41 = vadd.f32 %v1329_v39, %v1501_v18  ;;  %v1345_v42 = vpop.f32.mrb[12].mxu1  ;;  %v571_v43 = vpop.f32.mrb[13].mxu0 }
 0x100   : > { %1293 = vst [vmem:[%s1516_s27 + $0x68] sm:$0xff] %v1269_v37   ;;  %1284 = vst [vmem:[%s1516_s27 + $0x20] sm:$0xff] %v1224_v38   ;;  %v786_v44 = vadd.f32 %v1345_v42, %v1501_v18  ;;  %v768_v45 = vadd.f32 %v1501_v18, %v571_v43  ;;  %v635_v46 = vpop.f32.mrb[13].mxu1  ;;  %v1330_v47 = vpop.f32.mrb[14].mxu0 }
 0x101   : > { %1292 = vst [vmem:[%s1516_s27 + $0x60] sm:$0xff] %v1264_v40   ;;  %v784_v48 = vadd.f32 %v1501_v18, %v635_v46  ;;  %v771_v49 = vadd.f32 %v1330_v47, %v1501_v18  ;;  %v1346_v50 = vpop.f32.mrb[14].mxu1  ;;  %v574_v51 = vpop.f32.mrb[15].mxu0  ;;  %v802_v55 = vmax.f32 %v770_v41, 0.0 }
 0x102   : > { %v787_v52 = vadd.f32 %v1346_v50, %v1501_v18  ;;  %v769_v53 = vadd.f32 %v1501_v18, %v574_v51  ;;  %v638_v54 = vpop.f32.mrb[15].mxu1  ;;  %v818_v58 = vmax.f32 %v786_v44, 0.0  ;;  %v800_v59 = vmax.f32 %v768_v45, 0.0 }
 0x103   : > { %v803_v56 = vmax.f32 %v771_v49, 0.0  ;;  %v785_v57 = vadd.f32 %v1501_v18, %v638_v54  ;;  %v816_v62 = vmax.f32 %v784_v48, 0.0 }
 0x104   : > { %v819_v60 = vmax.f32 %v787_v52, 0.0  ;;  %v801_v61 = vmax.f32 %v769_v53, 0.0 }
 0x105   : > { %v1239_v63 = vpack.c.bf16 %v803_v56, %v802_v55  ;;  %v817_v0 = vmax.f32 %v785_v57, 0.0 }
 0x106   : > { %v1279_v1 = vpack.c.bf16 %v819_v60, %v818_v58  ;;  %v1234_v2 = vpack.c.bf16 %v801_v61, %v800_v59 }
 0x107   : > { %1287 = vst [vmem:[%s1516_s27 + $0x38] sm:$0xff] %v1239_v63   ;;  %v1274_v3 = vpack.c.bf16 %v817_v0, %v816_v62 }
 0x108   : > { %1295 = vst [vmem:[%s1516_s27 + $0x78] sm:$0xff] %v1279_v1   ;;  %1286 = vst [vmem:[%s1516_s27 + $0x30] sm:$0xff] %v1234_v2  }
 0x109   : > { %1294 = vst [vmem:[%s1516_s27 + $0x70] sm:$0xff] %v1274_v3  }
 0x10a PF: > { %s13_s14 = sadd.s32 1, %s1413_s14   ;;  %s1571_s12 = smov %s1409_s13 }
 0x10b   : > { %p10_p5 = scmp.ge.s32.totalorder %s13_s14, 4   ;;  %s1572_s13 = smov %s1574_s15 }
 0x10d   :  { %12 = sbr.rel (!%p10_p5) target bundleno = 2 (0x2), region = 76 }

// kernel: _lambda_.5
= control target key start
LH: loop header
LB: loop body
LE: loop exit
PB: predicated region body
PF: predicated region fallthrough
CT: control target
= control target key end

     0   :  { %s1405_s15 = smov 0   ;;  %s1407_s16 = smov 0   ;;  %s1611_s0 = inlined_call_operand.vmem [shape: bf16[512,4], index: 0, kind: input, shape index: {}]   ;;  %s1612_s1 = inlined_call_operand.vmem [shape: bf16[4,128], index: 1, kind: input, shape index: {}]   ;;  %s1613_s2 = inlined_call_operand.vmem [shape: f32[1,128], index: 2, kind: input, shape index: {}]   ;;  %s1614_s3 = inlined_call_operand.vmem [shape: bf16[512,128], index: 3, kind: input, shape index: {}]   ;;  %s1615_s4 = inlined_call_operand.vmem [shape: f32[512,128], index: 4, kind: output, shape index: {}]  }
   0x1   :  { %s1409_s17 = smov 0  }
   0x2 LB: > { %s33_s18 = sadd.s32 1, %s1374_s16  ;;  %p1140_p0 = scmp.ge.s32.totalorder %s1378_s17, 1  ;;  %s1378_s17 = sphi %s1409_s17, %s14_s17   ;;  %s1374_s16 = sphi %s1407_s16, %s1617_s16   ;;  %s1370_s15 = sphi %s1405_s15, %s1616_s15  }
   0x3   : > { %p35_p1 = scmp.ge.s32.totalorder %s33_s18, 2  ;;  %p227_p2 = scmp.lt.s32.totalorder %s1378_s17, 3 }
   0x5   : > { %s1619_s18 = smov (%p35_p1, %s33_s18), 0  ;;  %p228_p3 = pnand %p1140_p0, %p227_p2 }
   0x6   : > { %v415_v0 = vld [vmem:[%s1612_s1] sm:$0x3] (!%p228_p3)  ;;  %vm545_vm0 = vcmask (!%p228_p3), 1041408   ;;  %s1141_s21 = sshll.u32 (!%p228_p3), %s1370_s15, 5  ;;  %vm496_vm1 = vcmask (!%p228_p3), 31744  }
   0x7   : > { %231 = sbr.rel (%p228_p3) target bundleno = 266 (0x10a), region = 36  ;;  %1314 = vmatprep.subr.msk.bf16.mxu0 (!%p228_p3), %vm545_vm0, %v415_v0  ;;  %1315 = vmatprep.subr.msk.bf16.mxu1 (!%p228_p3), %vm545_vm0, %v415_v0  ;;  %v547_v1 = vsel (!%p228_p3), %vm545_vm0, %v415_v0, 0  ;;  %p278_p4 = scmp.lt.s32.totalorder (!%p228_p3), %s1141_s21, 63  ;;  %v1480_v20 = vld [vmem:[%s1613_s2] ss:$0 sm:$0xff] (!%p228_p3) }
   0x8   : > { %1279 = vmatpush3.bf16.msra.mxu0 (!%p228_p3), %v547_v1  ;;  %1313 = vmatpush3.bf16.msra.mxu1 (!%p228_p3), %v547_v1 }
   0xe   : > { %s1621_s21 = smov (!%p278_p4, %s1141_s21), 63 }
   0xf   : > { %s1142_s22 = sshll.u32 %s1621_s21, 2  ;;  %s1146_s5 = sshll.u32 %s1621_s21, 3 }
  0x10   : > { %s1434_s25 = scalar_lea.vmem %s1611_s0, %s1142_s22  ;;  %s1473_s28 = scalar_lea.vmem %s1614_s3, %s1142_s22 }
  0x11   : > { %v1340_v2 = vld [vmem:[%s1434_s25] sm:$0xff]   ;;  %v1342_v4 = vld [vmem:[%s1434_s25 + $0x8] sm:$0xff]   ;;  %v1344_v6 = vld [vmem:[%s1434_s25 + $0x10] sm:$0xff]   ;;  %s1493_s8 = scalar_lea.vmem %s1615_s4, %s1146_s5 }
  0x12   : > { %v1341_v3 = vld [vmem:[%s1434_s25 + $0x40] sm:$0xff]   ;;  %1280 = vmatprep.mubr.msk.bf16.mxu0 %vm496_vm1, %v1340_v2  ;;  %v1343_v5 = vld [vmem:[%s1434_s25 + $0x48] sm:$0xff]   ;;  %v1345_v7 = vld [vmem:[%s1434_s25 + $0x50] sm:$0xff]  }
  0x13   : > { %1296 = vmatprep.mubr.msk.bf16.mxu1 %vm496_vm1, %v1341_v3  ;;  %1281 = vmatmul.mubr.msk.bf16.vlgmr.msra.gmra.mrb[0].mxu0 %vm496_vm1, %v1342_v4  ;;  %v1346_v8 = vld [vmem:[%s1434_s25 + $0x18] sm:$0xff]   ;;  %v1348_v10 = vld [vmem:[%s1434_s25 + $0x20] sm:$0xff]   ;;  %v1350_v12 = vld [vmem:[%s1434_s25 + $0x28] sm:$0xff]  }
  0x14   : > { %1297 = vmatmul.mubr.msk.bf16.vlgmr.msra.gmra.mrb[0].mxu1 %vm496_vm1, %v1343_v5  ;;  %1284 = vmatprep.mubr.msk.bf16.mxu0 %vm496_vm1, %v1344_v6  ;;  %v1347_v9 = vld [vmem:[%s1434_s25 + $0x58] sm:$0xff]   ;;  %v1349_v11 = vld [vmem:[%s1434_s25 + $0x60] sm:$0xff]   ;;  %v1351_v13 = vld [vmem:[%s1434_s25 + $0x68] sm:$0xff]  }
  0x15   : > { %1300 = vmatprep.mubr.msk.bf16.mxu1 %vm496_vm1, %v1345_v7  ;;  %v1352_v14 = vld [vmem:[%s1434_s25 + $0x30] sm:$0xff]   ;;  %v1354_v16 = vld [vmem:[%s1434_s25 + $0x38] sm:$0xff]   ;;  %v1246_v18 = vld [vmem:[%s1473_s28 + $0x8] sm:$0xff]  }
  0x16   : > { %v1353_v15 = vld [vmem:[%s1434_s25 + $0x70] sm:$0xff]   ;;  %v1355_v17 = vld [vmem:[%s1434_s25 + $0x78] sm:$0xff]   ;;  %v1254_v19 = vld [vmem:[%s1473_s28 + $0x48] sm:$0xff]   ;;  %v1188_v24 = vunpack.c.l.bf16 %v1246_v18  ;;  %v1189_v31 = vunpack.c.h.bf16 %v1246_v18 }
  0x17   : > { %v1183_v21 = vld [vmem:[%s1473_s28] sm:$0xff]   ;;  %v1220_v25 = vunpack.c.l.bf16 %v1254_v19  ;;  %v1221_v36 = vunpack.c.h.bf16 %v1254_v19  ;;  %v1498_v49 = vld [vmem:[%s1473_s28 + $0x18] sm:$0xff]   ;;  %v1505_v55 = vld [vmem:[%s1473_s28 + $0x10] sm:$0xff]  }
  0x18   : > { %v1253_v22 = vld [vmem:[%s1473_s28 + $0x40] sm:$0xff]   ;;  %v1184_v29 = vunpack.c.l.bf16 %v1183_v21  ;;  %v1185_v37 = vunpack.c.h.bf16 %v1183_v21  ;;  %v1502_v54 = vld [vmem:[%s1473_s28 + $0x58] sm:$0xff]   ;;  %v1508_v60 = vld [vmem:[%s1473_s28 + $0x50] sm:$0xff]   ;;  %v1196_v0 = vunpack.c.l.bf16 %v1498_v49  ;;  %v1192_v5 = vunpack.c.l.bf16 %v1505_v55 }
  0x19   : > { %v1216_v30 = vunpack.c.l.bf16 %v1253_v22  ;;  %v1217_v43 = vunpack.c.h.bf16 %v1253_v22  ;;  %v1228_v4 = vunpack.c.l.bf16 %v1502_v54 }
  0x1b   : > { %1285 = vmatmul.mubr.msk.bf16.gmra.mrb[4].mxu0 %vm496_vm1, %v1346_v8 }
  0x1c   : > { %1301 = vmatmul.mubr.msk.bf16.gmra.mrb[4].mxu1 %vm496_vm1, %v1347_v9  ;;  %1288 = vmatprep.mubr.msk.bf16.mxu0 %vm496_vm1, %v1348_v10  ;;  %v1224_v10 = vunpack.c.l.bf16 %v1508_v60 }
  0x1d   : > { %1304 = vmatprep.mubr.msk.bf16.mxu1 %vm496_vm1, %v1349_v11  ;;  %v1197_v11 = vunpack.c.h.bf16 %v1498_v49 }
  0x23   : > { %1289 = vmatmul.mubr.msk.bf16.gmra.mrb[8].mxu0 %vm496_vm1, %v1350_v12 }
  0x24   : > { %1305 = vmatmul.mubr.msk.bf16.gmra.mrb[8].mxu1 %vm496_vm1, %v1351_v13  ;;  %1292 = vmatprep.mubr.msk.bf16.mxu0 %vm496_vm1, %v1352_v14 }
  0x25   : > { %1308 = vmatprep.mubr.msk.bf16.mxu1 %vm496_vm1, %v1353_v15 }
  0x2b   : > { %1293 = vmatmul.mubr.msk.bf16.gmra.mrb[12].mxu0 %vm496_vm1, %v1354_v16  ;;  %v1229_v16 = vunpack.c.h.bf16 %v1502_v54 }
  0x2c   : > { %1309 = vmatmul.mubr.msk.bf16.gmra.mrb[12].mxu1 %vm496_vm1, %v1355_v17  ;;  %v1193_v17 = vunpack.c.h.bf16 %v1505_v55 }
  0xe6   : > { %v1282_v23 = vpop.f32.mrb[0].mxu0 }
  0xe7   : > { %v818_v26 = vadd.f32 %v1282_v23, %v1480_v20  ;;  %v1298_v27 = vpop.f32.mrb[0].mxu1  ;;  %v583_v28 = vpop.f32.mrb[1].mxu0 }
  0xe8   : > { %v834_v32 = vadd.f32 %v1298_v27, %v1480_v20  ;;  %v816_v33 = vadd.f32 %v1480_v20, %v583_v28  ;;  %v647_v34 = vpop.f32.mrb[1].mxu1  ;;  %v1283_v35 = vpop.f32.mrb[2].mxu0 }
  0xe9   : > { %v850_v38 = vmax.f32 %v818_v26, 0.0  ;;  %v832_v39 = vadd.f32 %v1480_v20, %v647_v34  ;;  %v819_v40 = vadd.f32 %v1283_v35, %v1480_v20  ;;  %v1299_v41 = vpop.f32.mrb[2].mxu1  ;;  %v586_v42 = vpop.f32.mrb[3].mxu0  ;;  %v1538_v35 = vld [vmem:[%s1473_s28 + $0x68] sm:$0xff]  }
  0xea   : > { %v866_v44 = vmax.f32 %v834_v32, 0.0  ;;  %v848_v45 = vmax.f32 %v816_v33, 0.0  ;;  %v835_v46 = vadd.f32 %v1299_v41, %v1480_v20  ;;  %v817_v47 = vadd.f32 %v1480_v20, %v586_v42  ;;  %v650_v48 = vpop.f32.mrb[3].mxu1  ;;  %v1544_v41 = vld [vmem:[%s1473_s28 + $0x60] sm:$0xff]  }
  0xeb   : > { %v946_v50 = vadd.f32 %v1188_v24, %v850_v38  ;;  %v864_v51 = vmax.f32 %v832_v39, 0.0  ;;  %v851_v52 = vmax.f32 %v819_v40, 0.0  ;;  %v833_v53 = vadd.f32 %v1480_v20, %v650_v48 }
  0xec   : > { %v962_v56 = vadd.f32 %v1220_v25, %v866_v44  ;;  %v944_v57 = vadd.f32 %v1184_v29, %v848_v45  ;;  %v867_v58 = vmax.f32 %v835_v46, 0.0  ;;  %v849_v59 = vmax.f32 %v817_v47, 0.0 }
  0xed   : > { %978 = vst [vmem:[%s1493_s8 + $0x10] sm:$0xff] %v946_v50  ;;  %v960_v61 = vadd.f32 %v1216_v30, %v864_v51  ;;  %v947_v62 = vadd.f32 %v1189_v31, %v851_v52  ;;  %v865_v63 = vmax.f32 %v833_v53, 0.0  ;;  %v1225_v24 = vunpack.c.h.bf16 %v1508_v60  ;;  %v1534_v30 = vld [vmem:[%s1473_s28 + $0x28] sm:$0xff]  }
  0xee   : > { %994 = vst [vmem:[%s1493_s8 + $0x90] sm:$0xff] %v962_v56  ;;  %976 = vst [vmem:[%s1493_s8] sm:$0xff] %v944_v57  ;;  %v963_v1 = vadd.f32 %v1221_v36, %v867_v58  ;;  %v945_v2 = vadd.f32 %v1185_v37, %v849_v59  ;;  %v1286_v3 = vpop.f32.mrb[4].mxu0  ;;  %v1541_v36 = vld [vmem:[%s1473_s28 + $0x20] sm:$0xff]   ;;  %v1204_v45 = vunpack.c.l.bf16 %v1534_v30  ;;  %v1236_v49 = vunpack.c.l.bf16 %v1538_v35 }
  0xef   : > { %992 = vst [vmem:[%s1493_s8 + $0x80] sm:$0xff] %v960_v61  ;;  %979 = vst [vmem:[%s1493_s8 + $0x18] sm:$0xff] %v947_v62  ;;  %v961_v6 = vadd.f32 %v1217_v43, %v865_v63  ;;  %v822_v7 = vadd.f32 %v1286_v3, %v1480_v20  ;;  %v1302_v8 = vpop.f32.mrb[4].mxu1  ;;  %v599_v9 = vpop.f32.mrb[5].mxu0  ;;  %v1200_v50 = vunpack.c.l.bf16 %v1541_v36  ;;  %v1232_v55 = vunpack.c.l.bf16 %v1544_v41 }
  0xf0   : > { %995 = vst [vmem:[%s1493_s8 + $0x98] sm:$0xff] %v963_v1  ;;  %977 = vst [vmem:[%s1493_s8 + $0x8] sm:$0xff] %v945_v2  ;;  %v838_v12 = vadd.f32 %v1302_v8, %v1480_v20  ;;  %v820_v13 = vadd.f32 %v1480_v20, %v599_v9  ;;  %v663_v14 = vpop.f32.mrb[5].mxu1  ;;  %v1287_v15 = vpop.f32.mrb[6].mxu0  ;;  %v1205_v56 = vunpack.c.h.bf16 %v1534_v30  ;;  %v1237_v61 = vunpack.c.h.bf16 %v1538_v35 }
  0xf1   : > { %993 = vst [vmem:[%s1493_s8 + $0x88] sm:$0xff] %v961_v6  ;;  %v854_v18 = vmax.f32 %v822_v7, 0.0  ;;  %v836_v19 = vadd.f32 %v1480_v20, %v663_v14  ;;  %v823_v21 = vadd.f32 %v1287_v15, %v1480_v20  ;;  %v1303_v22 = vpop.f32.mrb[6].mxu1  ;;  %v602_v23 = vpop.f32.mrb[7].mxu0  ;;  %v1201_v62 = vunpack.c.h.bf16 %v1541_v36  ;;  %v1260_v15 = vld [vmem:[%s1473_s28 + $0x78] sm:$0xff]  }
  0xf2   : > { %v870_v25 = vmax.f32 %v838_v12, 0.0  ;;  %v852_v26 = vmax.f32 %v820_v13, 0.0  ;;  %v839_v27 = vadd.f32 %v1303_v22, %v1480_v20  ;;  %v821_v28 = vadd.f32 %v1480_v20, %v602_v23  ;;  %v666_v29 = vpop.f32.mrb[7].mxu1  ;;  %v1259_v22 = vld [vmem:[%s1473_s28 + $0x70] sm:$0xff]  }
  0xf3   : > { %v950_v31 = vadd.f32 %v1196_v0, %v854_v18  ;;  %v868_v32 = vmax.f32 %v836_v19, 0.0  ;;  %v855_v33 = vmax.f32 %v823_v21, 0.0  ;;  %v837_v34 = vadd.f32 %v1480_v20, %v666_v29 }
  0xf4   : > { %v966_v37 = vadd.f32 %v1228_v4, %v870_v25  ;;  %v948_v38 = vadd.f32 %v1192_v5, %v852_v26  ;;  %v871_v39 = vmax.f32 %v839_v27, 0.0  ;;  %v853_v40 = vmax.f32 %v821_v28, 0.0 }
  0xf5   : > { %982 = vst [vmem:[%s1493_s8 + $0x30] sm:$0xff] %v950_v31  ;;  %v964_v42 = vadd.f32 %v1224_v10, %v868_v32  ;;  %v951_v43 = vadd.f32 %v1197_v11, %v855_v33  ;;  %v869_v44 = vmax.f32 %v837_v34, 0.0  ;;  %v1233_v4 = vunpack.c.h.bf16 %v1544_v41  ;;  %v1570_v10 = vld [vmem:[%s1473_s28 + $0x38] sm:$0xff]  }
  0xf6   : > { %998 = vst [vmem:[%s1493_s8 + $0xb0] sm:$0xff] %v966_v37  ;;  %980 = vst [vmem:[%s1493_s8 + $0x20] sm:$0xff] %v948_v38  ;;  %v967_v46 = vadd.f32 %v1229_v16, %v871_v39  ;;  %v949_v47 = vadd.f32 %v1193_v17, %v853_v40  ;;  %v1290_v48 = vpop.f32.mrb[8].mxu0  ;;  %v1251_v16 = vld [vmem:[%s1473_s28 + $0x30] sm:$0xff]   ;;  %v1212_v26 = vunpack.c.l.bf16 %v1570_v10  ;;  %v1244_v30 = vunpack.c.l.bf16 %v1260_v15 }
  0xf7   : > { %996 = vst [vmem:[%s1493_s8 + $0xa0] sm:$0xff] %v964_v42  ;;  %983 = vst [vmem:[%s1493_s8 + $0x38] sm:$0xff] %v951_v43  ;;  %v965_v51 = vadd.f32 %v1225_v24, %v869_v44  ;;  %v826_v52 = vadd.f32 %v1290_v48, %v1480_v20  ;;  %v1306_v53 = vpop.f32.mrb[8].mxu1  ;;  %v615_v54 = vpop.f32.mrb[9].mxu0  ;;  %v1208_v31 = vunpack.c.l.bf16 %v1251_v16  ;;  %v1240_v36 = vunpack.c.l.bf16 %v1259_v22 }
  0xf8   : > { %999 = vst [vmem:[%s1493_s8 + $0xb8] sm:$0xff] %v967_v46  ;;  %981 = vst [vmem:[%s1493_s8 + $0x28] sm:$0xff] %v949_v47  ;;  %v842_v57 = vadd.f32 %v1306_v53, %v1480_v20  ;;  %v824_v58 = vadd.f32 %v1480_v20, %v615_v54  ;;  %v679_v59 = vpop.f32.mrb[9].mxu1  ;;  %v1291_v60 = vpop.f32.mrb[10].mxu0  ;;  %v1213_v37 = vunpack.c.h.bf16 %v1570_v10  ;;  %v1245_v42 = vunpack.c.h.bf16 %v1260_v15 }
  0xf9   : > { %997 = vst [vmem:[%s1493_s8 + $0xa8] sm:$0xff] %v965_v51  ;;  %v858_v63 = vmax.f32 %v826_v52, 0.0  ;;  %v840_v0 = vadd.f32 %v1480_v20, %v679_v59  ;;  %v827_v1 = vadd.f32 %v1291_v60, %v1480_v20  ;;  %v1307_v2 = vpop.f32.mrb[10].mxu1  ;;  %v618_v3 = vpop.f32.mrb[11].mxu0  ;;  %v1209_v43 = vunpack.c.h.bf16 %v1251_v16 }
  0xfa   : > { %v874_v5 = vmax.f32 %v842_v57, 0.0  ;;  %v856_v6 = vmax.f32 %v824_v58, 0.0  ;;  %v843_v7 = vadd.f32 %v1307_v2, %v1480_v20  ;;  %v825_v8 = vadd.f32 %v1480_v20, %v618_v3  ;;  %v682_v9 = vpop.f32.mrb[11].mxu1 }
  0xfb   : > { %v954_v11 = vadd.f32 %v1204_v45, %v858_v63  ;;  %v872_v12 = vmax.f32 %v840_v0, 0.0  ;;  %v859_v13 = vmax.f32 %v827_v1, 0.0  ;;  %v841_v14 = vadd.f32 %v1480_v20, %v682_v9 }
  0xfc   : > { %v970_v17 = vadd.f32 %v1236_v49, %v874_v5  ;;  %v952_v18 = vadd.f32 %v1200_v50, %v856_v6  ;;  %v875_v19 = vmax.f32 %v843_v7, 0.0  ;;  %v857_v21 = vmax.f32 %v825_v8, 0.0 }
  0xfd   : > { %986 = vst [vmem:[%s1493_s8 + $0x50] sm:$0xff] %v954_v11  ;;  %v968_v23 = vadd.f32 %v1232_v55, %v872_v12  ;;  %v955_v24 = vadd.f32 %v1205_v56, %v859_v13  ;;  %v873_v25 = vmax.f32 %v841_v14, 0.0  ;;  %v1241_v49 = vunpack.c.h.bf16 %v1259_v22 }
  0xfe   : > { %1002 = vst [vmem:[%s1493_s8 + $0xd0] sm:$0xff] %v970_v17  ;;  %984 = vst [vmem:[%s1493_s8 + $0x40] sm:$0xff] %v952_v18  ;;  %v971_v27 = vadd.f32 %v1237_v61, %v875_v19  ;;  %v953_v28 = vadd.f32 %v1201_v62, %v857_v21  ;;  %v1294_v29 = vpop.f32.mrb[12].mxu0 }
  0xff   : > { %1000 = vst [vmem:[%s1493_s8 + $0xc0] sm:$0xff] %v968_v23  ;;  %987 = vst [vmem:[%s1493_s8 + $0x58] sm:$0xff] %v955_v24  ;;  %v969_v32 = vadd.f32 %v1233_v4, %v873_v25  ;;  %v830_v33 = vadd.f32 %v1294_v29, %v1480_v20  ;;  %v1310_v34 = vpop.f32.mrb[12].mxu1  ;;  %v631_v35 = vpop.f32.mrb[13].mxu0 }
 0x100   : > { %1003 = vst [vmem:[%s1493_s8 + $0xd8] sm:$0xff] %v971_v27  ;;  %985 = vst [vmem:[%s1493_s8 + $0x48] sm:$0xff] %v953_v28  ;;  %v846_v38 = vadd.f32 %v1310_v34, %v1480_v20  ;;  %v828_v39 = vadd.f32 %v1480_v20, %v631_v35  ;;  %v695_v40 = vpop.f32.mrb[13].mxu1  ;;  %v1295_v41 = vpop.f32.mrb[14].mxu0 }
 0x101   : > { %1001 = vst [vmem:[%s1493_s8 + $0xc8] sm:$0xff] %v969_v32  ;;  %v862_v44 = vmax.f32 %v830_v33, 0.0  ;;  %v844_v45 = vadd.f32 %v1480_v20, %v695_v40  ;;  %v831_v46 = vadd.f32 %v1295_v41, %v1480_v20  ;;  %v1311_v47 = vpop.f32.mrb[14].mxu1  ;;  %v634_v48 = vpop.f32.mrb[15].mxu0 }
 0x102   : > { %v878_v50 = vmax.f32 %v846_v38, 0.0  ;;  %v860_v51 = vmax.f32 %v828_v39, 0.0  ;;  %v847_v52 = vadd.f32 %v1311_v47, %v1480_v20  ;;  %v829_v53 = vadd.f32 %v1480_v20, %v634_v48  ;;  %v698_v54 = vpop.f32.mrb[15].mxu1 }
 0x103   : > { %v958_v55 = vadd.f32 %v1212_v26, %v862_v44  ;;  %v876_v56 = vmax.f32 %v844_v45, 0.0  ;;  %v863_v57 = vmax.f32 %v831_v46, 0.0  ;;  %v845_v58 = vadd.f32 %v1480_v20, %v698_v54 }
 0x104   : > { %v974_v59 = vadd.f32 %v1244_v30, %v878_v50  ;;  %v956_v60 = vadd.f32 %v1208_v31, %v860_v51  ;;  %v879_v61 = vmax.f32 %v847_v52, 0.0  ;;  %v861_v62 = vmax.f32 %v829_v53, 0.0 }
 0x105   : > { %990 = vst [vmem:[%s1493_s8 + $0x70] sm:$0xff] %v958_v55  ;;  %v972_v63 = vadd.f32 %v1240_v36, %v876_v56  ;;  %v959_v0 = vadd.f32 %v1213_v37, %v863_v57  ;;  %v877_v1 = vmax.f32 %v845_v58, 0.0 }
 0x106   : > { %1006 = vst [vmem:[%s1493_s8 + $0xf0] sm:$0xff] %v974_v59  ;;  %988 = vst [vmem:[%s1493_s8 + $0x60] sm:$0xff] %v956_v60  ;;  %v975_v2 = vadd.f32 %v1245_v42, %v879_v61  ;;  %v957_v3 = vadd.f32 %v1209_v43, %v861_v62 }
 0x107   : > { %1004 = vst [vmem:[%s1493_s8 + $0xe0] sm:$0xff] %v972_v63  ;;  %991 = vst [vmem:[%s1493_s8 + $0x78] sm:$0xff] %v959_v0  ;;  %v973_v4 = vadd.f32 %v1241_v49, %v877_v1 }
 0x108   : > { %1007 = vst [vmem:[%s1493_s8 + $0xf8] sm:$0xff] %v975_v2  ;;  %989 = vst [vmem:[%s1493_s8 + $0x68] sm:$0xff] %v957_v3 }
 0x109   : > { %1005 = vst [vmem:[%s1493_s8 + $0xe8] sm:$0xff] %v973_v4 }
 0x10a PF: > { %s14_s17 = sadd.s32 1, %s1378_s17   ;;  %s1616_s15 = smov %s1374_s16 }
 0x10b   : > { %p11_p5 = scmp.ge.s32.totalorder %s14_s17, 4   ;;  %s1617_s16 = smov %s1619_s18 }
 0x10d   :  { %13 = sbr.rel (!%p11_p5) target bundleno = 2 (0x2), region = 83 }

// kernel: _lambda_.4
= control target key start
LH: loop header
LB: loop body
LE: loop exit
PB: predicated region body
PF: predicated region fallthrough
CT: control target
= control target key end

     0   :  { %s1475_s12 = smov 0   ;;  %s1477_s13 = smov 0   ;;  %s1613_s0 = inlined_call_operand.vmem [shape: bf16[512,36], index: 0, kind: input, shape index: {}]   ;;  %s1614_s1 = inlined_call_operand.vmem [shape: bf16[36,128], index: 1, kind: input, shape index: {}]   ;;  %s1615_s2 = inlined_call_operand.vmem [shape: f32[1,128], index: 2, kind: input, shape index: {}]   ;;  %s1616_s3 = inlined_call_operand.vmem [shape: bf16[512,128], index: 3, kind: output, shape index: {}]  }
   0x1   :  { %s1479_s14 = smov 0  }
   0x2 LB: > { %s32_s15 = sadd.s32 1, %s1449_s13  ;;  %p1121_p0 = scmp.ge.s32.totalorder %s1453_s14, 1  ;;  %s1453_s14 = sphi %s1479_s14, %s13_s14   ;;  %s1449_s13 = sphi %s1477_s13, %s1618_s13   ;;  %s1445_s12 = sphi %s1475_s12, %s1617_s12  }
   0x3   : > { %p34_p1 = scmp.ge.s32.totalorder %s32_s15, 2  ;;  %p188_p2 = scmp.lt.s32.totalorder %s1453_s14, 3 }
   0x5   : > { %s1620_s15 = smov (%p34_p1, %s32_s15), 0  ;;  %p189_p3 = pnand %p1121_p0, %p188_p2 }
   0x6   : > { %v1412_v0 = vld [vmem:[%s1614_s1] sm:$0xff] (!%p189_p3)   ;;  %v1413_v1 = vld [vmem:[%s1614_s1 + $0x8] sm:$0xff] (!%p189_p3)   ;;  %s1122_s20 = sshll.u32 (!%p189_p3), %s1445_s12, 5  ;;  %v1414_v2 = vld [vmem:[%s1614_s1 + $0x10] ss:$0 sps:$4 sm:$0x33] (!%p189_p3)  }
   0x7   : > { %192 = sbr.rel (%p189_p3) target bundleno = 266 (0x10a), region = 32  ;;  %1342 = vmatprep.subr.bf16.mxu0 (!%p189_p3), %v1412_v0  ;;  %1380 = vmatprep.subr.bf16.mxu1 (!%p189_p3), %v1412_v0  ;;  %p230_p4 = scmp.lt.s32.totalorder (!%p189_p3), %s1122_s20, 63  ;;  %vm509_vm0 = vcmask (!%p189_p3), 1041408   ;;  %vm460_vm1 = vcmask (!%p189_p3), 293888   ;;  %v1547_v20 = vld [vmem:[%s1615_s2] ss:$0 sm:$0xff] (!%p189_p3) }
   0x8   : > { %1343 = vmatpush3.bf16.msra.mxu0 (!%p189_p3), %v1412_v0  ;;  %1383 = vmatpush3.bf16.msra.mxu1 (!%p189_p3), %v1412_v0  ;;  %v511_v3 = vsel (!%p189_p3), %vm509_vm0, %v1414_v2, 0 }
   0x9   : > { %1344 = vmatprep.subr.bf16.mxu0 (!%p189_p3), %v1413_v1  ;;  %1381 = vmatprep.subr.bf16.mxu1 (!%p189_p3), %v1413_v1 }
   0xc   : > { %1345 = vmatpush3.bf16.msra.mxu0 (!%p189_p3), %v1413_v1  ;;  %1384 = vmatpush3.bf16.msra.mxu1 (!%p189_p3), %v1413_v1 }
   0xd   : > { %1386 = vmatprep.subr.msk.bf16.mxu0 (!%p189_p3), %vm509_vm0, %v1414_v2  ;;  %1387 = vmatprep.subr.msk.bf16.mxu1 (!%p189_p3), %vm509_vm0, %v1414_v2 }
   0xe   : > { %s1622_s20 = smov (!%p230_p4, %s1122_s20), 63 }
   0xf   : > { %s1123_s23 = sshll.u32 %s1622_s20, 2 }
  0x10   : > { %s1510_s26 = scalar_lea.vmem %s1613_s0, %s1123_s23  ;;  %1347 = vmatpush3.bf16.msra.mxu0 %v511_v3  ;;  %1385 = vmatpush3.bf16.msra.mxu1 %v511_v3  ;;  %s1562_s4 = scalar_lea.vmem %s1616_s3, %s1123_s23 }
  0x11   : > { %v1415_v4 = vld [vmem:[%s1510_s26] sm:$0xff]   ;;  %v1417_v6 = vld [vmem:[%s1510_s26 + $0x8] sm:$0xff]   ;;  %v1419_v8 = vld [vmem:[%s1510_s26 + $0x10] sm:$0xff]  }
  0x12   : > { %v1416_v5 = vld [vmem:[%s1510_s26 + $0x40] sm:$0xff]   ;;  %1348 = vmatprep.mubr.msk.bf16.mxu0 %vm460_vm1, %v1415_v4  ;;  %v1418_v7 = vld [vmem:[%s1510_s26 + $0x48] sm:$0xff]   ;;  %v1420_v9 = vld [vmem:[%s1510_s26 + $0x50] sm:$0xff]  }
  0x13   : > { %1364 = vmatprep.mubr.msk.bf16.mxu1 %vm460_vm1, %v1416_v5  ;;  %1349 = vmatmul.mubr.msk.bf16.vlgmr.msra.gmra.mrb[0].mxu0 %vm460_vm1, %v1417_v6  ;;  %v1421_v10 = vld [vmem:[%s1510_s26 + $0x18] sm:$0xff]   ;;  %v1423_v12 = vld [vmem:[%s1510_s26 + $0x20] sm:$0xff]   ;;  %v1425_v14 = vld [vmem:[%s1510_s26 + $0x28] sm:$0xff]  }
  0x14   : > { %1365 = vmatmul.mubr.msk.bf16.vlgmr.msra.gmra.mrb[0].mxu1 %vm460_vm1, %v1418_v7  ;;  %1352 = vmatprep.mubr.msk.bf16.mxu0 %vm460_vm1, %v1419_v8  ;;  %v1422_v11 = vld [vmem:[%s1510_s26 + $0x58] sm:$0xff]   ;;  %v1424_v13 = vld [vmem:[%s1510_s26 + $0x60] sm:$0xff]   ;;  %v1426_v15 = vld [vmem:[%s1510_s26 + $0x68] sm:$0xff]  }
  0x15   : > { %1368 = vmatprep.mubr.msk.bf16.mxu1 %vm460_vm1, %v1420_v9  ;;  %v1427_v16 = vld [vmem:[%s1510_s26 + $0x30] sm:$0xff]   ;;  %v1429_v18 = vld [vmem:[%s1510_s26 + $0x38] sm:$0xff]  }
  0x16   : > { %v1428_v17 = vld [vmem:[%s1510_s26 + $0x70] sm:$0xff]   ;;  %v1430_v19 = vld [vmem:[%s1510_s26 + $0x78] sm:$0xff]  }
  0x1b   : > { %1353 = vmatmul.mubr.msk.bf16.gmra.mrb[4].mxu0 %vm460_vm1, %v1421_v10 }
  0x1c   : > { %1369 = vmatmul.mubr.msk.bf16.gmra.mrb[4].mxu1 %vm460_vm1, %v1422_v11  ;;  %1356 = vmatprep.mubr.msk.bf16.mxu0 %vm460_vm1, %v1423_v12 }
  0x1d   : > { %1372 = vmatprep.mubr.msk.bf16.mxu1 %vm460_vm1, %v1424_v13 }
  0x23   : > { %1357 = vmatmul.mubr.msk.bf16.gmra.mrb[8].mxu0 %vm460_vm1, %v1425_v14 }
  0x24   : > { %1373 = vmatmul.mubr.msk.bf16.gmra.mrb[8].mxu1 %vm460_vm1, %v1426_v15  ;;  %1360 = vmatprep.mubr.msk.bf16.mxu0 %vm460_vm1, %v1427_v16 }
  0x25   : > { %1376 = vmatprep.mubr.msk.bf16.mxu1 %vm460_vm1, %v1428_v17 }
  0x2b   : > { %1361 = vmatmul.mubr.msk.bf16.gmra.mrb[12].mxu0 %vm460_vm1, %v1429_v18 }
  0x2c   : > { %1377 = vmatmul.mubr.msk.bf16.gmra.mrb[12].mxu1 %vm460_vm1, %v1430_v19 }
  0xe6   : > { %v1350_v21 = vpop.f32.mrb[0].mxu0 }
  0xe7   : > { %v1366_v22 = vpop.f32.mrb[0].mxu1  ;;  %v782_v23 = vadd.f32 %v1350_v21, %v1547_v20  ;;  %v547_v25 = vpop.f32.mrb[1].mxu0 }
  0xe8   : > { %v798_v24 = vadd.f32 %v1366_v22, %v1547_v20  ;;  %v611_v26 = vpop.f32.mrb[1].mxu1  ;;  %v780_v27 = vadd.f32 %v1547_v20, %v547_v25  ;;  %v1351_v29 = vpop.f32.mrb[2].mxu0 }
  0xe9   : > { %v796_v28 = vadd.f32 %v1547_v20, %v611_v26  ;;  %v1367_v30 = vpop.f32.mrb[2].mxu1  ;;  %v783_v31 = vadd.f32 %v1351_v29, %v1547_v20  ;;  %v550_v33 = vpop.f32.mrb[3].mxu0  ;;  %v814_v37 = vmax.f32 %v782_v23, 0.0 }
  0xea   : > { %v799_v32 = vadd.f32 %v1367_v30, %v1547_v20  ;;  %v614_v34 = vpop.f32.mrb[3].mxu1  ;;  %v781_v35 = vadd.f32 %v1547_v20, %v550_v33  ;;  %v830_v38 = vmax.f32 %v798_v24, 0.0  ;;  %v812_v41 = vmax.f32 %v780_v27, 0.0 }
  0xeb   : > { %v797_v36 = vadd.f32 %v1547_v20, %v614_v34  ;;  %v815_v39 = vmax.f32 %v783_v31, 0.0  ;;  %v828_v42 = vmax.f32 %v796_v28, 0.0 }
  0xec   : > { %v831_v40 = vmax.f32 %v799_v32, 0.0  ;;  %v813_v43 = vmax.f32 %v781_v35, 0.0 }
  0xed   : > { %v829_v44 = vmax.f32 %v797_v36, 0.0  ;;  %v1236_v45 = vpack.c.bf16 %v815_v39, %v814_v37 }
  0xee   : > { %v1276_v46 = vpack.c.bf16 %v831_v40, %v830_v38  ;;  %v1231_v47 = vpack.c.bf16 %v813_v43, %v812_v41  ;;  %v1354_v49 = vpop.f32.mrb[4].mxu0 }
  0xef   : > { %v1271_v48 = vpack.c.bf16 %v829_v44, %v828_v42  ;;  %v1370_v50 = vpop.f32.mrb[4].mxu1  ;;  %1308 = vst [vmem:[%s1562_s4 + $0x8] sm:$0xff] %v1236_v45   ;;  %v786_v51 = vadd.f32 %v1354_v49, %v1547_v20  ;;  %v563_v53 = vpop.f32.mrb[5].mxu0 }
  0xf0   : > { %1316 = vst [vmem:[%s1562_s4 + $0x48] sm:$0xff] %v1276_v46   ;;  %v802_v52 = vadd.f32 %v1370_v50, %v1547_v20  ;;  %v627_v54 = vpop.f32.mrb[5].mxu1  ;;  %1232 = vst [vmem:[%s1562_s4] sm:$0xff] %v1231_v47   ;;  %v784_v55 = vadd.f32 %v1547_v20, %v563_v53  ;;  %v1355_v57 = vpop.f32.mrb[6].mxu0 }
  0xf1   : > { %1315 = vst [vmem:[%s1562_s4 + $0x40] sm:$0xff] %v1271_v48   ;;  %v800_v56 = vadd.f32 %v1547_v20, %v627_v54  ;;  %v1371_v58 = vpop.f32.mrb[6].mxu1  ;;  %v787_v59 = vadd.f32 %v1355_v57, %v1547_v20  ;;  %v566_v61 = vpop.f32.mrb[7].mxu0  ;;  %v818_v1 = vmax.f32 %v786_v51, 0.0 }
  0xf2   : > { %v803_v60 = vadd.f32 %v1371_v58, %v1547_v20  ;;  %v630_v62 = vpop.f32.mrb[7].mxu1  ;;  %v785_v63 = vadd.f32 %v1547_v20, %v566_v61  ;;  %v834_v2 = vmax.f32 %v802_v52, 0.0  ;;  %v816_v5 = vmax.f32 %v784_v55, 0.0 }
  0xf3   : > { %v801_v0 = vadd.f32 %v1547_v20, %v630_v62  ;;  %v819_v3 = vmax.f32 %v787_v59, 0.0  ;;  %v832_v6 = vmax.f32 %v800_v56, 0.0 }
  0xf4   : > { %v835_v4 = vmax.f32 %v803_v60, 0.0  ;;  %v817_v7 = vmax.f32 %v785_v63, 0.0 }
  0xf5   : > { %v833_v8 = vmax.f32 %v801_v0, 0.0  ;;  %v1246_v9 = vpack.c.bf16 %v819_v3, %v818_v1 }
  0xf6   : > { %v1286_v10 = vpack.c.bf16 %v835_v4, %v834_v2  ;;  %v1241_v11 = vpack.c.bf16 %v817_v7, %v816_v5  ;;  %v1358_v13 = vpop.f32.mrb[8].mxu0 }
  0xf7   : > { %v1281_v12 = vpack.c.bf16 %v833_v8, %v832_v6  ;;  %v1374_v14 = vpop.f32.mrb[8].mxu1  ;;  %1310 = vst [vmem:[%s1562_s4 + $0x18] sm:$0xff] %v1246_v9   ;;  %v790_v15 = vadd.f32 %v1358_v13, %v1547_v20  ;;  %v579_v17 = vpop.f32.mrb[9].mxu0 }
  0xf8   : > { %1318 = vst [vmem:[%s1562_s4 + $0x58] sm:$0xff] %v1286_v10   ;;  %v806_v16 = vadd.f32 %v1374_v14, %v1547_v20  ;;  %v643_v18 = vpop.f32.mrb[9].mxu1  ;;  %1309 = vst [vmem:[%s1562_s4 + $0x10] sm:$0xff] %v1241_v11   ;;  %v788_v19 = vadd.f32 %v1547_v20, %v579_v17  ;;  %v1359_v22 = vpop.f32.mrb[10].mxu0 }
  0xf9   : > { %1317 = vst [vmem:[%s1562_s4 + $0x50] sm:$0xff] %v1281_v12   ;;  %v804_v21 = vadd.f32 %v1547_v20, %v643_v18  ;;  %v1375_v23 = vpop.f32.mrb[10].mxu1  ;;  %v791_v24 = vadd.f32 %v1359_v22, %v1547_v20  ;;  %v582_v26 = vpop.f32.mrb[11].mxu0  ;;  %v822_v30 = vmax.f32 %v790_v15, 0.0 }
  0xfa   : > { %v807_v25 = vadd.f32 %v1375_v23, %v1547_v20  ;;  %v646_v27 = vpop.f32.mrb[11].mxu1  ;;  %v789_v28 = vadd.f32 %v1547_v20, %v582_v26  ;;  %v838_v31 = vmax.f32 %v806_v16, 0.0  ;;  %v820_v34 = vmax.f32 %v788_v19, 0.0 }
  0xfb   : > { %v805_v29 = vadd.f32 %v1547_v20, %v646_v27  ;;  %v823_v32 = vmax.f32 %v791_v24, 0.0  ;;  %v836_v35 = vmax.f32 %v804_v21, 0.0 }
  0xfc   : > { %v839_v33 = vmax.f32 %v807_v25, 0.0  ;;  %v821_v36 = vmax.f32 %v789_v28, 0.0 }
  0xfd   : > { %v837_v37 = vmax.f32 %v805_v29, 0.0  ;;  %v1256_v38 = vpack.c.bf16 %v823_v32, %v822_v30 }
  0xfe   : > { %v1296_v39 = vpack.c.bf16 %v839_v33, %v838_v31  ;;  %v1251_v40 = vpack.c.bf16 %v821_v36, %v820_v34  ;;  %v1362_v42 = vpop.f32.mrb[12].mxu0 }
  0xff   : > { %v1291_v41 = vpack.c.bf16 %v837_v37, %v836_v35  ;;  %v1378_v43 = vpop.f32.mrb[12].mxu1  ;;  %1312 = vst [vmem:[%s1562_s4 + $0x28] sm:$0xff] %v1256_v38   ;;  %v794_v44 = vadd.f32 %v1362_v42, %v1547_v20  ;;  %v595_v46 = vpop.f32.mrb[13].mxu0 }
 0x100   : > { %1320 = vst [vmem:[%s1562_s4 + $0x68] sm:$0xff] %v1296_v39   ;;  %v810_v45 = vadd.f32 %v1378_v43, %v1547_v20  ;;  %v659_v47 = vpop.f32.mrb[13].mxu1  ;;  %1311 = vst [vmem:[%s1562_s4 + $0x20] sm:$0xff] %v1251_v40   ;;  %v792_v48 = vadd.f32 %v1547_v20, %v595_v46  ;;  %v1363_v50 = vpop.f32.mrb[14].mxu0 }
 0x101   : > { %1319 = vst [vmem:[%s1562_s4 + $0x60] sm:$0xff] %v1291_v41   ;;  %v808_v49 = vadd.f32 %v1547_v20, %v659_v47  ;;  %v1379_v51 = vpop.f32.mrb[14].mxu1  ;;  %v795_v52 = vadd.f32 %v1363_v50, %v1547_v20  ;;  %v598_v54 = vpop.f32.mrb[15].mxu0  ;;  %v826_v58 = vmax.f32 %v794_v44, 0.0 }
 0x102   : > { %v811_v53 = vadd.f32 %v1379_v51, %v1547_v20  ;;  %v662_v55 = vpop.f32.mrb[15].mxu1  ;;  %v793_v56 = vadd.f32 %v1547_v20, %v598_v54  ;;  %v842_v59 = vmax.f32 %v810_v45, 0.0  ;;  %v824_v62 = vmax.f32 %v792_v48, 0.0 }
 0x103   : > { %v809_v57 = vadd.f32 %v1547_v20, %v662_v55  ;;  %v827_v60 = vmax.f32 %v795_v52, 0.0  ;;  %v840_v63 = vmax.f32 %v808_v49, 0.0 }
 0x104   : > { %v843_v61 = vmax.f32 %v811_v53, 0.0  ;;  %v825_v0 = vmax.f32 %v793_v56, 0.0 }
 0x105   : > { %v841_v1 = vmax.f32 %v809_v57, 0.0  ;;  %v1266_v2 = vpack.c.bf16 %v827_v60, %v826_v58 }
 0x106   : > { %v1306_v3 = vpack.c.bf16 %v843_v61, %v842_v59  ;;  %v1261_v4 = vpack.c.bf16 %v825_v0, %v824_v62 }
 0x107   : > { %v1301_v5 = vpack.c.bf16 %v841_v1, %v840_v63  ;;  %1314 = vst [vmem:[%s1562_s4 + $0x38] sm:$0xff] %v1266_v2  }
 0x108   : > { %1322 = vst [vmem:[%s1562_s4 + $0x78] sm:$0xff] %v1306_v3   ;;  %1313 = vst [vmem:[%s1562_s4 + $0x30] sm:$0xff] %v1261_v4  }
 0x109   : > { %1321 = vst [vmem:[%s1562_s4 + $0x70] sm:$0xff] %v1301_v5  }
 0x10a PF: > { %s13_s14 = sadd.s32 1, %s1453_s14   ;;  %s1617_s12 = smov %s1449_s13 }
 0x10b   : > { %p10_p5 = scmp.ge.s32.totalorder %s13_s14, 4   ;;  %s1618_s13 = smov %s1620_s15 }
 0x10d   :  { %12 = sbr.rel (!%p10_p5) target bundleno = 2 (0x2), region = 76 }

</bundles_post_ra>
